<compile_context>
chip_gen: v7x
topology: tpu7x:2x2x1
jax: 0.10.0
libtpu: 0.0.40
codegen_flags: <defaults>
</compile_context>

<pallas_src>
import jax
import jax.numpy as jnp
from jax.experimental import pallas as pl
from jax.experimental.pallas import tpu as pltpu

_LANE = 128


def _mish_kernel(x_ref, o_ref):
    x = x_ref[...]
    xf = x.astype(jnp.float32)
    # mish(x) = x * tanh(softplus(x))
    # tanh(log(1 + e)) = ((1+e)^2 - 1) / ((1+e)^2 + 1) = n / (n + 2), n = e*(e+2)
    # -> one exp + one divide instead of exp + log1p + tanh.
    e = jnp.exp(jnp.minimum(xf, 20.0))               # clamp avoids inf/inf -> NaN
    n = e * (e + 2.0)
    ratio = jnp.where(xf > 20.0, 1.0, n / (n + 2.0))  # exact saturation for large x
    o_ref[...] = (xf * ratio).astype(o_ref.dtype)


def _round_up(a: int, b: int) -> int:
    return -(-a // b) * b


def mish_init(x: jax.Array, *, target_block_bytes: int = 4 * 1024 * 1024) -> jax.Array:
    """Apply Mish (x * tanh(softplus(x))) elementwise via a Pallas TPU kernel."""
    orig_shape = x.shape
    dtype = x.dtype
    total = x.size
    if total == 0:
        return x

    itemsize = jnp.dtype(dtype).itemsize
    # Sublane packing multiple: 8 for 32-bit, 16 for 16-bit, 32 for 8-bit dtypes.
    sub_mult = max(8, 32 // max(1, itemsize))

    # Fast path: widest lane-dense column count that divides the flat size
    # -> the (rows, cols) reshape is a free view (no pad / slice copies).
    cols = 0
    for cand in (2048, 1024, 512, 256, 128):
        if total % cand == 0:
            cols = cand
            break

    flat = x.reshape(-1)
    padded_total = total
    if cols:
        rows = total // cols
    else:
        # Ragged flat size: pad the tail with zeros (Mish(0) == 0 -> harmless).
        cols = 8 * _LANE
        rows = _round_up(-(-total // cols), sub_mult)
        padded_total = rows * cols
        flat = jnp.pad(flat, (0, padded_total - total))

    x2d = flat.reshape(rows, cols)

    # ~target_block_bytes per block; tile rows rounded to the sublane multiple
    # so vreg loads/stores are unmasked.  Double-buffered in+out ~16 MiB.
    max_tile_rows = max(sub_mult, target_block_bytes // (cols * itemsize))
    max_tile_rows = (max_tile_rows // sub_mult) * sub_mult
    if rows <= max_tile_rows:
        tile_rows = rows            # single block; full-extent dims are always legal
    else:
        tile_rows = max_tile_rows   # multiple of sub_mult; Pallas masks ragged tail

    grid = (pl.cdiv(rows, tile_rows),)

    out2d = pl.pallas_call(
        _mish_kernel,
        out_shape=jax.ShapeDtypeStruct((rows, cols), dtype),
        grid_spec=pltpu.PrefetchScalarGridSpec(
            num_scalar_prefetch=0,
            grid=grid,
            in_specs=[pl.BlockSpec((tile_rows, cols), lambda i: (i, 0))],
            out_specs=pl.BlockSpec((tile_rows, cols), lambda i: (i, 0)),
        ),
        compiler_params=pltpu.CompilerParams(
            dimension_semantics=("parallel",),
            vmem_limit_bytes=32 * 1024 * 1024,
        ),
    )(x2d)

    out_flat = out2d.reshape(-1)
    if padded_total != total:
        out_flat = out_flat[:total]
    return out_flat.reshape(orig_shape)


def _mish_ref(x):
    # Pure-JAX reference for correctness check.
    return x * jnp.tanh(jax.nn.softplus(x))


if __name__ == "__main__":
    key = jax.random.PRNGKey(0)

    # Shapes consistent with a typical NCHW activation: batch=2, C=4, H=W=16.
    x = jax.random.normal(key, (2, 4, 16, 16), dtype=jnp.float32) * 3.0
    y = jax.block_until_ready(mish_init(x))
    y_ref = _mish_ref(x)
    assert y.shape == x.shape and y.dtype == x.dtype
    assert jnp.allclose(y, y_ref, atol=1e-5, rtol=1e-5), "mismatch vs reference"

    # Also exercise the ragged/padding fallback path (flat size not % 128).
    x2 = jax.random.normal(jax.random.PRNGKey(1), (3, 5, 7, 11), dtype=jnp.float32) * 3.0
    y2 = jax.block_until_ready(mish_init(x2))
    assert y2.shape == x2.shape and y2.dtype == x2.dtype
    assert jnp.allclose(y2, _mish_ref(x2), atol=1e-5, rtol=1e-5), "mismatch (ragged path)"

    print("KERNEL_OK")
</pallas_src>

<mosaic_0001>
module attributes {stable_mosaic.version = 11 : i64} {
  func.func @_mish_kernel(%arg0: i32, %arg1: memref<1x2048xf32, #tpu.memory_space<vmem>>, %arg2: memref<1x2048xf32, #tpu.memory_space<vmem>>) attributes {dimension_semantics = [#tpu.dimension_semantics<parallel>], iteration_bounds = array<i64: 1>, scalar_prefetch = 0 : i64, scratch_operands = 0 : i64, tpu.core_type = #tpu.core_type<tc>, window_params = [{transform_indices = @transform_0, window_bounds = array<i64: 1, 2048>}, {transform_indices = @transform_1, window_bounds = array<i64: 1, 2048>}]} {
    %c0 = arith.constant 0 : index
    %c0_0 = arith.constant 0 : index
    %0 = vector.load %arg1[%c0, %c0_0] : memref<1x2048xf32, #tpu.memory_space<vmem>>, vector<1x2048xf32>
    %cst = arith.constant 2.000000e+01 : f32
    %1 = vector.broadcast %cst : f32 to vector<1x2048xf32>
    %2 = arith.minimumf %0, %1 : vector<1x2048xf32>
    %3 = math.exp %2 : vector<1x2048xf32>
    %cst_1 = arith.constant 2.000000e+00 : f32
    %4 = vector.broadcast %cst_1 : f32 to vector<1x2048xf32>
    %5 = arith.addf %3, %4 : vector<1x2048xf32>
    %6 = arith.mulf %3, %5 : vector<1x2048xf32>
    %cst_2 = arith.constant 2.000000e+01 : f32
    %7 = vector.broadcast %cst_2 : f32 to vector<1x2048xf32>
    %8 = arith.cmpf ogt, %0, %7 : vector<1x2048xf32>
    %cst_3 = arith.constant 2.000000e+00 : f32
    %9 = vector.broadcast %cst_3 : f32 to vector<1x2048xf32>
    %10 = arith.addf %6, %9 : vector<1x2048xf32>
    %11 = arith.divf %6, %10 : vector<1x2048xf32>
    %cst_4 = arith.constant 1.000000e+00 : f32
    %12 = vector.broadcast %cst_4 : f32 to vector<1x2048xf32>
    %13 = arith.select %8, %12, %11 : vector<1x2048xi1>, vector<1x2048xf32>
    %14 = arith.mulf %0, %13 : vector<1x2048xf32>
    %c0_5 = arith.constant 0 : index
    %c0_6 = arith.constant 0 : index
    %15 = vector.load %arg2[%c0_5, %c0_6] : memref<1x2048xf32, #tpu.memory_space<vmem>>, vector<1x2048xf32>
    tpu.vector_store %arg2[%c0_5, %c0_6], %14 {strides = array<i32>} : memref<1x2048xf32, #tpu.memory_space<vmem>>, vector<1x2048xf32>,
    return
  }
  func.func @transform_0(%arg0: i32) -> (i32, i32) {
    %c0_i32 = arith.constant 0 : i32
    %c0_i32_0 = arith.constant 0 : i32
    return %arg0, %c0_i32 : i32, i32
  }
  func.func @transform_1(%arg0: i32) -> (i32, i32) {
    %c0_i32 = arith.constant 0 : i32
    %c0_i32_0 = arith.constant 0 : i32
    return %arg0, %c0_i32 : i32, i32
  }
}

</mosaic_0001>

<bundles_post_ra>
// kernel: tpu_custom_call.1
= control target key start
LH: loop header
LB: loop body
LE: loop exit
PB: predicated region body
PF: predicated region fallthrough
CT: control target
= control target key end

     0   :  { %6 = vsyncpa [#allocation3], 0  ;;  %s156_s0 = inlined_call_operand.hbm [shape: f32[1,2048], index: 0, kind: input, shape index: {}]   ;;  %s157_s1 = inlined_call_operand.hbm [shape: f32[1,2048], index: 1, kind: output, shape index: {}]  }
   0x1   :  { %7 = vsyncpa [#allocation4], 0  ;;  %s120_s6 = smov [#allocation2]   ;;  %s72_s10 = scalar_lea.hbm %s156_s0, 256 }
   0x2   :  { %s14_s7 = sshll.u32 %s120_s6, 4  ;;  %p73_p0 = scmp.ne.s32.totalorder %s156_s0, %s72_s10  ;;  %s15_s7 = int_to_ptr.vmem [resolvable:$true] %s14_s7 }
   0x3   :  { %p76_p1 = scmp.lt.u32.totalorder %s72_s10, %s156_s0 }
   0x5   :  { %p78_p2 = pnand %p76_p1, %p73_p0 }
   0x7   :  { %81 = shalt.err (!%p78_p2)
}
   0x8   :  { %s82_s15 = scalar_lea.vmem %s15_s7, 256  ;;  %p87_p4 = scmp.lt.s32.totalorder %s15_s7, %s15_s7 }
   0x9   :  { %p83_p3 = scmp.ne.s32.totalorder %s15_s7, %s82_s15  ;;  %p88_p5 = scmp.lt.s32.totalorder %s82_s15, %s82_s15 }
   0xb   :  { %p89_p6 = por %p88_p5, %p87_p4 }
   0xd   :  { %p90_p7 = pnand %p89_p6, %p83_p3 }
   0xf   :  { %93 = shalt.err (!%p90_p7)
}
  0x10   :  { %17 = dma.hbm_to_vmem [thread:$0]  %s156_s0, 256, %s15_s7, [#allocation3]  }
  0x11   :  { %116 = dma.done.wait [#allocation3], 256  }
  0x12   :  { %117 = vsyncadd [#allocation3], 4294967040  ;;  %v21_v0 = vld [vmem:[#allocation2] sm:$0xff]  ;;  %v22_v1 = vld [vmem:[#allocation2 + $0x8] sm:$0xff]  ;;  %s121_s0 = smov [#allocation5]  }
  0x13   :  { %v23_v2 = vmin.f32 %v21_v0, 20.0  ;;  %v24_v3 = vmin.f32 %v22_v1, 20.0  ;;  %vm33_vm0 = vcmp.gt.f32.partialorder %v21_v0, 20.0  ;;  %vm34_vm1 = vcmp.gt.f32.partialorder %v22_v1, 20.0  ;;  %s53_s18 = sshll.u32 %s121_s0, 4  ;;  %s54_s18 = int_to_ptr.vmem [resolvable:$true] %s53_s18 }
  0x14   :  { %s94_s19 = scalar_lea.vmem %s54_s18, 256  ;;  %p99_p9 = scmp.lt.s32.totalorder %s54_s18, %s54_s18 }
  0x15   :  { %v25_v4 = vmul.f32 1.442695, %v23_v2  ;;  %v27_v5 = vmul.f32 1.442695, %v24_v3  ;;  %p95_p8 = scmp.ne.s32.totalorder %s54_s18, %s94_s19  ;;  %p100_p10 = scmp.lt.s32.totalorder %s94_s19, %s94_s19 }
  0x17   :  { %64 = vpow2.f32 %v25_v4  ;;  %p101_p11 = por %p100_p10, %p99_p9 }
  0x18   :  { %66 = vpow2.f32 %v27_v5 }
  0x19   :  { %p102_p12 = pnand %p101_p11, %p95_p8 }
  0x21   :  { %v65_v6 = vpop.eup %64 }
  0x22   :  { %v67_v7 = vpop.eup %66  ;;  %v29_v8 = vadd.f32 2.0, %v65_v6 }
  0x23   :  { %v30_v9 = vadd.f32 2.0, %v67_v7 }
  0x24   :  { %v31_v10 = vmul.f32 %v65_v6, %v29_v8 }
  0x25   :  { %v32_v11 = vmul.f32 %v67_v7, %v30_v9 }
  0x26   :  { %v35_v12 = vadd.f32 2.0, %v31_v10 }
  0x27   :  { %v36_v13 = vadd.f32 2.0, %v32_v11 }
  0x28   :  { %68 = vrcp.f32 %v35_v12 }
  0x29   :  { %70 = vrcp.f32 %v36_v13 }
  0x32   :  { %v69_v14 = vpop.eup %68 }
  0x33   :  { %v71_v15 = vpop.eup %70  ;;  %v38_v16 = vmul.f32 %v69_v14, %v31_v10 }
  0x34   :  { %v40_v17 = vmul.f32 %v71_v15, %v32_v11 }
  0x35   :  { %v41_v18 = vsel %vm33_vm0, 1.0, %v38_v16 }
  0x36   :  { %v43_v19 = vmul.f32 %v41_v18, %v21_v0  ;;  %v42_v20 = vsel %vm34_vm1, 1.0, %v40_v17 }
  0x37   :  { %v44_v21 = vmul.f32 %v42_v20, %v22_v1 }
  0x38   :  { %45 = vst [vmem:[#allocation5] sm:$0xff] %v43_v19 }
  0x39   :  { %46 = vst [vmem:[#allocation5 + $0x8] sm:$0xff] %v44_v21 }
  0x3a   :  { %105 = shalt.err (!%p102_p12)
}
  0x3b   :  { %s106_s22 = scalar_lea.hbm %s157_s1, 256 }
  0x3c   :  { %p107_p13 = scmp.ne.s32.totalorder %s157_s1, %s106_s22  ;;  %p110_p0 = scmp.lt.u32.totalorder %s106_s22, %s157_s1 }
  0x3e   :  { %p112_p1 = pnand %p110_p0, %p107_p13 }
  0x40   :  { %115 = shalt.err (!%p112_p1)
}
  0x41   :  { %56 = dma.vmem_to_hbm [thread:$0]  %s54_s18, 256, %s157_s1, [#allocation4]  }
  0x42   :  { %118 = dma.done.wait [#allocation4], 256  }
  0x43   :  { %119 = vsyncadd [#allocation4], 4294967040 }
  0x44   :  { %60 = vsyncpa [#allocation3], 1 }
  0x45   :  { %61 = vsyncpa [#allocation4], 1 }

</bundles_post_ra>
